<compile_context>
chip_gen: v6e
topology: v6e:2x2x1
jax: 0.10.0
libtpu: 0.0.40
codegen_flags: <defaults>
</compile_context>

<pallas_src>
import functools

import jax
import jax.numpy as jnp
from jax.experimental import pallas as pl
from jax.experimental.pallas import tpu as pltpu

IN_FEATS = 200   # len(feats) == len([f'P_{t}' for t in range(200)])
N_TARGETS = 5    # PAM50-style BRCA subtypes (LumA, LumB, Basal, Her2, Normal)
T_PAD = 8        # padded output lanes (tiny; full-array last dim => legal block)


def _round_up(x, m):
    return ((x + m - 1) // m) * m


def mlp_kernel(x_ref, w_ref, b_ref, o_ref):
    # x_ref: [tm, F]     f32 (streamed per grid step, double-buffered)
    # w_ref: [F, T_PAD]  f32 (constant index_map -> fetched once, VMEM-resident)
    # b_ref: [1, T_PAD]  f32 (VMEM-resident)
    # o_ref: [tm, T_PAD] f32 (masked vst on 8 lanes; store slots have huge slack)
    y = jnp.dot(x_ref[...], w_ref[...], preferred_element_type=jnp.float32)
    o_ref[...] = y + b_ref[...]


def prepare_params(weight, bias):
    """Pad the Linear params once (hoisted out of the per-call path).

    weight: [F, T] f32 (pre-transposed PyTorch weight, i.e. weight.T)
    bias:   [T]    f32
    returns (w_p: [F, T_PAD] f32, b_p: [1, T_PAD] f32)
    """
    F, T = weight.shape
    assert T <= T_PAD
    w_p = jnp.zeros((F, T_PAD), jnp.float32).at[:, :T].set(weight.astype(jnp.float32))
    b_p = jnp.zeros((1, T_PAD), jnp.float32).at[0, :T].set(bias.astype(jnp.float32))
    return w_p, b_p


@functools.partial(jax.jit, static_argnames=("block_batch",))
def mlp_forward(x, w_p, b_p, *, block_batch=2048):
    """x: [B, F] f32, (w_p, b_p) from prepare_params -> [B, N_TARGETS] f32."""
    B, F = x.shape
    assert w_p.shape == (F, T_PAD) and b_p.shape == (1, T_PAD)

    # Batch tile: multiple of 8 sublanes, large to amortize per-step overhead.
    tm = min(block_batch, _round_up(B, 8))
    # For large batches keep >= 2 grid steps so ("parallel",) can shard the
    # batch across v7x's 2 TensorCores (measured-neutral on v5e/v6e).
    if B >= 1024:
        tm = min(tm, _round_up(pl.cdiv(B, 2), 8))
    grid = (pl.cdiv(B, tm),)  # ragged final block: Pallas masks its writes

    cost = pl.CostEstimate(
        flops=2 * B * F * T_PAD,
        transcendentals=0,
        bytes_accessed=B * F * 4 + B * T_PAD * 4 + F * T_PAD * 4 + T_PAD * 4,
    )

    out_padded = pl.pallas_call(
        mlp_kernel,
        out_shape=jax.ShapeDtypeStruct((B, T_PAD), jnp.float32),
        grid_spec=pltpu.PrefetchScalarGridSpec(
            num_scalar_prefetch=0,
            grid=grid,
            in_specs=[
                # x: tiled over batch, streamed straight from HBM (no copy).
                pl.BlockSpec((tm, F), lambda i: (i, 0)),
                # weight / bias: constant index_map -> DMA'd once, stay in VMEM.
                pl.BlockSpec((F, T_PAD), lambda i: (0, 0)),
                pl.BlockSpec((1, T_PAD), lambda i: (0, 0)),
            ],
            out_specs=pl.BlockSpec((tm, T_PAD), lambda i: (i, 0)),
        ),
        compiler_params=pltpu.CompilerParams(
            dimension_semantics=("parallel",),
            vmem_limit_bytes=32 * 1024 * 1024,
        ),
        cost_estimate=cost,
    )(x, w_p, b_p)

    # Tiny epilogue slice (8 -> 5 lanes); negligible vs the old 128-lane slab.
    return out_padded[:, :N_TARGETS]


if __name__ == "__main__":
    key = jax.random.PRNGKey(0)
    kx, kw, kb, kx2 = jax.random.split(key, 4)

    # Deterministic synthetic parameters (shapes match the PyTorch Linear).
    bound = 1.0 / (IN_FEATS ** 0.5)
    weight = jax.random.uniform(kw, (IN_FEATS, N_TARGETS),
                                minval=-bound, maxval=bound, dtype=jnp.float32)
    bias = jax.random.uniform(kb, (N_TARGETS,),
                              minval=-bound, maxval=bound, dtype=jnp.float32)

    # Pad / stage params ONCE (hoisted out of the per-call path).
    w_p, b_p = prepare_params(weight, bias)

    # Small shipped-shape batch (single grid step).
    batch = 8
    x = jax.random.normal(kx, (batch, IN_FEATS), dtype=jnp.float32)
    out = mlp_forward(x, w_p, b_p)
    jax.block_until_ready(out)
    ref = x @ weight + bias
    assert out.shape == (batch, N_TARGETS)
    assert jnp.allclose(out, ref, atol=2e-2, rtol=2e-2)  # MXU default-precision tol

    # Exercise the tiled / ragged path (grid > 1, batch not a tile multiple).
    batch2 = 600
    x2 = jax.random.normal(kx2, (batch2, IN_FEATS), dtype=jnp.float32)
    out2 = mlp_forward(x2, w_p, b_p, block_batch=256)
    jax.block_until_ready(out2)
    ref2 = x2 @ weight + bias
    assert out2.shape == (batch2, N_TARGETS)
    assert jnp.allclose(out2, ref2, atol=2e-2, rtol=2e-2)

    print("KERNEL_OK")
</pallas_src>

<mosaic_0001>
module attributes {stable_mosaic.version = 11 : i64} {
  func.func @mlp_kernel(%arg0: i32, %arg1: memref<8x200xf32, #tpu.memory_space<vmem>>, %arg2: memref<200x8xf32, #tpu.memory_space<vmem>>, %arg3: memref<1x8xf32, #tpu.memory_space<vmem>>, %arg4: memref<8x8xf32, #tpu.memory_space<vmem>>) attributes {dimension_semantics = [#tpu.dimension_semantics<parallel>], iteration_bounds = array<i64: 1>, scalar_prefetch = 0 : i64, scratch_operands = 0 : i64, tpu.core_type = #tpu.core_type<tc>, window_params = [{transform_indices = @transform_0, window_bounds = array<i64: 8, 200>}, {pipeline_mode = #tpu.pipeline_mode<synchronous>, transform_indices = @transform_1, window_bounds = array<i64: 200, 8>}, {pipeline_mode = #tpu.pipeline_mode<synchronous>, transform_indices = @transform_2, window_bounds = array<i64: 1, 8>}, {transform_indices = @transform_3, window_bounds = array<i64: 8, 8>}]} {
    %c0 = arith.constant 0 : index
    %c0_0 = arith.constant 0 : index
    %0 = vector.load %arg1[%c0, %c0_0] : memref<8x200xf32, #tpu.memory_space<vmem>>, vector<8x200xf32>
    %c0_1 = arith.constant 0 : index
    %c0_2 = arith.constant 0 : index
    %1 = vector.load %arg2[%c0_1, %c0_2] : memref<200x8xf32, #tpu.memory_space<vmem>>, vector<200x8xf32>
    %cst = arith.constant dense<0.000000e+00> : vector<8x8xf32>
    %2 = tpu.matmul %0, %1, %cst {dimension_numbers = #tpu.dot_dimension_numbers<[1], [0], [0], [1], [0, 0, 1, 1], [], []>} : vector<8x200xf32>, vector<200x8xf32>, vector<8x8xf32> -> vector<8x8xf32>
    %c0_3 = arith.constant 0 : index
    %c0_4 = arith.constant 0 : index
    %3 = vector.load %arg3[%c0_3, %c0_4] : memref<1x8xf32, #tpu.memory_space<vmem>>, vector<1x8xf32>
    %4 = vector.broadcast %3 : vector<1x8xf32> to vector<8x8xf32>
    %5 = arith.addf %2, %4 : vector<8x8xf32>
    %c0_5 = arith.constant 0 : index
    %c0_6 = arith.constant 0 : index
    %6 = vector.load %arg4[%c0_5, %c0_6] : memref<8x8xf32, #tpu.memory_space<vmem>>, vector<8x8xf32>
    tpu.vector_store %arg4[%c0_5, %c0_6], %5 {strides = array<i32>} : memref<8x8xf32, #tpu.memory_space<vmem>>, vector<8x8xf32>,
    return
  }
  func.func @transform_0(%arg0: i32) -> (i32, i32) {
    %c0_i32 = arith.constant 0 : i32
    %c0_i32_0 = arith.constant 0 : i32
    return %arg0, %c0_i32 : i32, i32
  }
  func.func @transform_1(%arg0: i32) -> (i32, i32) {
    %c0_i32 = arith.constant 0 : i32
    %c0_i32_0 = arith.constant 0 : i32
    %c0_i32_1 = arith.constant 0 : i32
    return %c0_i32, %c0_i32_0 : i32, i32
  }
  func.func @transform_2(%arg0: i32) -> (i32, i32) {
    %c0_i32 = arith.constant 0 : i32
    %c0_i32_0 = arith.constant 0 : i32
    %c0_i32_1 = arith.constant 0 : i32
    return %c0_i32, %c0_i32_0 : i32, i32
  }
  func.func @transform_3(%arg0: i32) -> (i32, i32) {
    %c0_i32 = arith.constant 0 : i32
    %c0_i32_0 = arith.constant 0 : i32
    return %arg0, %c0_i32 : i32, i32
  }
}

</mosaic_0001>

<bundles_post_ra>
// kernel: mlp_forward.1
= control target key start
LH: loop header
LB: loop body
LE: loop exit
PB: predicated region body
PF: predicated region fallthrough
CT: control target
= control target key end

     0   :  { %v165_v1 = vmov 0.0   ;;  %vm49_vm0 = vcmask 588800   ;;  %s299_s0 = inlined_call_operand.vmem [shape: f32[8,200], index: 0, kind: input, shape index: {}]   ;;  %s300_s1 = inlined_call_operand.vmem [shape: f32[200,8], index: 1, kind: input, shape index: {}]   ;;  %s301_s2 = inlined_call_operand.vmem [shape: f32[1,8], index: 2, kind: input, shape index: {}]   ;;  %s302_s3 = inlined_call_operand.hbm [shape: f32[8,8], index: 3, kind: output, shape index: {}]  }
   0x1   :  { %v32_v0 = vld [vmem:[%s300_s1 + $0x78] sm:$0xff]  ;;  %53 = vmatprep.subr.mxu0 %v165_v1  ;;  %v31_v2 = vld [vmem:[%s300_s1 + $0x70] sm:$0xff]  ;;  %v30_v3 = vld [vmem:[%s300_s1 + $0x68] sm:$0xff] }
   0x2   :  { %54 = vmatpush1.msra.mxu0 %v32_v0  ;;  %v29_v4 = vld [vmem:[%s300_s1 + $0x60] sm:$0xff]  ;;  %v28_v5 = vld [vmem:[%s300_s1 + $0x58] sm:$0xff]  ;;  %v16_v6 = vld [vmem:[%s299_s0 + $0x8] sm:$0xff] }
   0x3   :  { %55 = vmatprep.subr.mxu0 %v165_v1  ;;  %v27_v7 = vld [vmem:[%s300_s1 + $0x50] sm:$0xff]  ;;  %140 = vmatprep.mubr.msk.f32.mxu0 %vm49_vm0, %v16_v6 }
   0x4   :  { %56 = vmatpush1.msra.mxu0 %v31_v2 }
   0x5   :  { %57 = vmatprep.subr.mxu0 %v165_v1 }
   0x6   :  { %58 = vmatpush1.msra.mxu0 %v30_v3 }
   0x7   :  { %59 = vmatprep.subr.mxu0 %v165_v1 }
   0x8   :  { %60 = vmatpush1.msra.mxu0 %v29_v4 }
   0x9   :  { %61 = vmatprep.subr.mxu0 %v165_v1 }
   0xa   :  { %8 = vsyncpa [#allocation3], 0  ;;  %62 = vmatpush1.msra.mxu0 %v28_v5  ;;  %v26_v8 = vld [vmem:[%s300_s1 + $0x48] sm:$0xff]  ;;  %v25_v9 = vld [vmem:[%s300_s1 + $0x40] sm:$0xff]  ;;  %s166_s14 = smov [#allocation2]   ;;  %vm123_vm1 = vcmask 64512  }
   0xb   :  { %63 = vmatprep.subr.mxu0 %v165_v1  ;;  %v24_v10 = vld [vmem:[%s300_s1 + $0x38] sm:$0xff]  ;;  %v23_v11 = vld [vmem:[%s300_s1 + $0x30] sm:$0xff]  ;;  %v22_v12 = vld [vmem:[%s300_s1 + $0x28] sm:$0xff]  ;;  %s131_s15 = sshll.u32 %s166_s14, 4  ;;  %s132_s15 = int_to_ptr.vmem [resolvable:$true] %s131_s15 }
   0xc   :  { %64 = vmatpush1.msra.mxu0 %v27_v7  ;;  %v21_v13 = vld [vmem:[%s300_s1 + $0x20] sm:$0xff]  ;;  %v20_v14 = vld [vmem:[%s300_s1 + $0x18] sm:$0xff]  ;;  %v19_v15 = vld [vmem:[%s300_s1 + $0x10] sm:$0xff]  ;;  %p148_p1 = scmp.lt.s32.totalorder %s132_s15, %s132_s15 }
   0xd   :  { %65 = vmatprep.subr.mxu0 %v165_v1  ;;  %v18_v16 = vld [vmem:[%s300_s1 + $0x8] sm:$0xff]  ;;  %v17_v17 = vld [vmem:[%s300_s1] sm:$0xff]  ;;  %v40_v19 = vld [vmem:[%s300_s1 + $0xb8] sm:$0xff] }
   0xe   :  { %66 = vmatpush1.msra.mxu0 %v26_v8  ;;  %v41_v18 = vld [vmem:[%s300_s1 + $0xc0] sm:$0xff]  ;;  %v39_v20 = vld [vmem:[%s300_s1 + $0xb0] sm:$0xff]  ;;  %v38_v21 = vld [vmem:[%s300_s1 + $0xa8] sm:$0xff] }
   0xf   :  { %67 = vmatprep.subr.mxu0 %v165_v1  ;;  %v37_v22 = vld [vmem:[%s300_s1 + $0xa0] sm:$0xff]  ;;  %v36_v23 = vld [vmem:[%s300_s1 + $0x98] sm:$0xff]  ;;  %v35_v24 = vld [vmem:[%s300_s1 + $0x90] sm:$0xff] }
  0x10   :  { %68 = vmatpush1.msra.mxu0 %v25_v9  ;;  %v34_v25 = vld [vmem:[%s300_s1 + $0x88] sm:$0xff]  ;;  %v33_v26 = vld [vmem:[%s300_s1 + $0x80] sm:$0xff]  ;;  %s143_s1 = scalar_lea.vmem %s132_s15, 128 }
  0x11   :  { %69 = vmatprep.subr.mxu0 %v165_v1  ;;  %v15_v27 = vld [vmem:[%s299_s0] sm:$0xff]  ;;  %p144_p0 = scmp.ne.s32.totalorder %s132_s15, %s143_s1  ;;  %p149_p2 = scmp.lt.s32.totalorder %s143_s1, %s143_s1 }
  0x12   :  { %70 = vmatpush1.msra.mxu0 %v24_v10  ;;  %v139_v28 = vld [vmem:[%s301_s2] ss:$0 sm:$0xff] }
  0x13   :  { %71 = vmatprep.subr.mxu0 %v165_v1  ;;  %p150_p3 = por %p149_p2, %p148_p1 }
  0x14   :  { %72 = vmatpush1.msra.mxu0 %v23_v11 }
  0x15   :  { %73 = vmatprep.subr.mxu0 %v165_v1  ;;  %p151_p4 = pnand %p150_p3, %p144_p0 }
  0x16   :  { %74 = vmatpush1.msra.mxu0 %v22_v12 }
  0x17   :  { %75 = vmatprep.subr.mxu0 %v165_v1 }
  0x18   :  { %76 = vmatpush1.msra.mxu0 %v21_v13 }
  0x19   :  { %77 = vmatprep.subr.mxu0 %v165_v1 }
  0x1a   :  { %78 = vmatpush1.msra.mxu0 %v20_v14 }
  0x1b   :  { %79 = vmatprep.subr.mxu0 %v165_v1 }
  0x1c   :  { %80 = vmatpush1.msra.mxu0 %v19_v15 }
  0x1d   :  { %81 = vmatprep.subr.mxu0 %v165_v1 }
  0x1e   :  { %82 = vmatpush1.msra.mxu0 %v18_v16 }
  0x1f   :  { %83 = vmatprep.subr.mxu0 %v165_v1 }
  0x20   :  { %84 = vmatpush1.msra.mxu0 %v17_v17 }
  0x21   :  { %99 = vmatprep.subr.mxu0 %v165_v1 }
  0x22   :  { %100 = vmatpush2.msra.mxu0 %v41_v18 }
  0x23   :  { %101 = vmatprep.subr.mxu0 %v165_v1 }
  0x24   :  { %102 = vmatpush2.msra.mxu0 %v40_v19 }
  0x25   :  { %103 = vmatprep.subr.mxu0 %v165_v1 }
  0x26   :  { %104 = vmatpush2.msra.mxu0 %v39_v20 }
  0x27   :  { %105 = vmatprep.subr.mxu0 %v165_v1 }
  0x28   :  { %106 = vmatpush2.msra.mxu0 %v38_v21 }
  0x29   :  { %107 = vmatprep.subr.mxu0 %v165_v1 }
  0x2a   :  { %108 = vmatpush2.msra.mxu0 %v37_v22 }
  0x2b   :  { %109 = vmatprep.subr.mxu0 %v165_v1 }
  0x2c   :  { %110 = vmatpush2.msra.mxu0 %v36_v23 }
  0x2d   :  { %111 = vmatprep.subr.mxu0 %v165_v1 }
  0x2e   :  { %112 = vmatpush2.msra.mxu0 %v35_v24 }
  0x2f   :  { %113 = vmatprep.subr.mxu0 %v165_v1 }
  0x30   :  { %114 = vmatpush2.msra.mxu0 %v34_v25 }
  0x31   :  { %115 = vmatprep.subr.mxu0 %v165_v1 }
  0x32   :  { %116 = vmatpush2.msra.mxu0 %v33_v26 }
  0x33   :  { %118 = vmatmul.mubr.f32.vlgmr.msra.gmra.mxu0 %v15_v27 }
  0xf3   :  { %v119_v29 = vpop.f32.mrf.mxu0 }
  0xf4   :  { %v120_v30 = vadd.f32 %v139_v28, %v119_v29 }
  0xf5   :  { %v121_v31 = vpop.f32.mrf.mxu0 }
  0xf6   :  { %124 = vst.msk [vmem:[#allocation2] sm:$0xff] %vm123_vm1, %v120_v30 }
  0xf7   :  { %154 = shalt.err (!%p151_p4)
}
  0xf8   :  { %134 = dma.vmem_to_hbm [thread:$0]  %s132_s15, 128, %s302_s3, [#allocation3]  }
  0xf9   :  { %163 = dma.done.wait [#allocation3], 128  }
  0xfa   :  { %164 = vsyncadd [#allocation3], 4294967168 }
  0xfb   :  { %138 = vsyncpa [#allocation3], 1 }

</bundles_post_ra>
